<compile_context>
chip_gen: v5e
topology: v5e:2x2
jax: 0.10.0
libtpu: 0.0.40
codegen_flags: <defaults>
</compile_context>

<pallas_src>
import numpy as np
import jax
import jax.numpy as jnp
from jax.experimental import pallas as pl
from jax.experimental.pallas import tpu as pltpu

N = 256  # alphabet size (uint8 values 0..255)


def _hadamard_256() -> np.ndarray:
  """H[c, w] = (-1)^popcount(c & w). Symmetric; H @ H = 256 * I."""
  idx = np.arange(N, dtype=np.uint32)
  a = idx[:, None] & idx[None, :]
  pop = np.zeros_like(a)
  for k in range(8):
    pop += (a >> k) & 1
  return np.where((pop & 1) == 0, 1.0, -1.0).astype(np.float32)


def _softxor_kernel(x_ref, y_ref, h_ref, o_ref):
  # x_ref, y_ref: (TB, 256) f32 batch tiles (lane-dense value axis)
  # h_ref:        (256, 256) bf16 Hadamard constant (resident, index_map const)
  # o_ref:        (TB, 256) output tile (lane-dense, unmasked stores)
  h = h_ref[...]
  xh = jnp.dot(x_ref[...].astype(jnp.bfloat16), h,
               preferred_element_type=jnp.float32)
  yh = jnp.dot(y_ref[...].astype(jnp.bfloat16), h,
               preferred_element_type=jnp.float32)
  # Pointwise WHT product in f32; 1/256 normalization is a power of two (exact).
  p = xh * yh * (1.0 / N)
  o_ref[...] = jnp.dot(p.astype(jnp.bfloat16), h,
                       preferred_element_type=jnp.float32).astype(o_ref.dtype)


def _round_up(n: int, m: int) -> int:
  return ((n + m - 1) // m) * m


@jax.jit
def soft_xor(x: jax.Array, y: jax.Array) -> jax.Array:
  """Pallas implementation of SoftXOR.forward. x, y: (B, 256) f32 -> (B, 256) f32."""
  B = x.shape[0]
  # Batch tile: multiple of 8 (f32 sublanes); 512 rows keeps the working set
  # (~3.3 MiB double-buffered + 128 KiB constant) well under every chip's VMEM
  # while amortizing per-grid-step overhead and feeding both v7x TensorCores.
  TB = min(512, _round_up(B, 8))
  Bp = _round_up(B, TB)
  if Bp != B:
    x = jnp.pad(x, ((0, Bp - B), (0, 0)))
    y = jnp.pad(y, ((0, Bp - B), (0, 0)))

  h = jnp.asarray(_hadamard_256(), dtype=jnp.bfloat16)  # 128 KiB constant

  out = pl.pallas_call(
      _softxor_kernel,
      out_shape=jax.ShapeDtypeStruct((Bp, N), x.dtype),
      grid=(Bp // TB,),
      in_specs=[
          pl.BlockSpec((TB, N), lambda b: (b, 0)),
          pl.BlockSpec((TB, N), lambda b: (b, 0)),
          pl.BlockSpec((N, N), lambda b: (0, 0)),  # Hadamard, same block every step
      ],
      out_specs=pl.BlockSpec((TB, N), lambda b: (b, 0)),
      compiler_params=pltpu.CompilerParams(
          dimension_semantics=("parallel",)),
  )(x, y, h)
  return out[:B]


def soft_xor_reference(x: jax.Array, y: jax.Array) -> jax.Array:
  """Plain-JAX mirror of the PyTorch forward (gather + broadcast-mul + sum)."""
  idx = jnp.arange(N, dtype=jnp.int32)
  xor_idx = (idx[:, None] ^ idx[None, :]).reshape(-1)        # (N*N,)
  y_perm = jnp.take(y, xor_idx, axis=1).reshape(-1, N, N)    # y_perm[b,r,c] = y[b, r^c]
  return (x[:, None, :] * y_perm).sum(axis=-1)


if __name__ == "__main__":
  key = jax.random.PRNGKey(0)
  kx, ky = jax.random.split(key)
  B = 2
  x = jax.random.normal(kx, (B, N), dtype=jnp.float32)
  y = jax.random.normal(ky, (B, N), dtype=jnp.float32)

  out = jax.block_until_ready(soft_xor(x, y))

  assert out.shape == (B, N), out.shape
  assert out.dtype == jnp.float32, out.dtype

  ref = soft_xor_reference(x, y)
  scale = jnp.maximum(jnp.max(jnp.abs(ref)), 1.0)
  rel_err = float(jnp.max(jnp.abs(out - ref)) / scale)
  if rel_err > 1e-2:
    raise AssertionError(f"SoftXOR kernel mismatch: rel_err={rel_err}")

  print("KERNEL_OK")
</pallas_src>

<mosaic_0001>
module attributes {stable_mosaic.version = 11 : i64} {
  func.func @_softxor_kernel(%arg0: i32, %arg1: memref<8x256xf32, #tpu.memory_space<vmem>>, %arg2: memref<8x256xf32, #tpu.memory_space<vmem>>, %arg3: memref<256x256xbf16, #tpu.memory_space<vmem>>, %arg4: memref<8x256xf32, #tpu.memory_space<vmem>>) attributes {dimension_semantics = [#tpu.dimension_semantics<parallel>], iteration_bounds = array<i64: 1>, scalar_prefetch = 0 : i64, scratch_operands = 0 : i64, tpu.core_type = #tpu.core_type<tc>, window_params = [{transform_indices = @transform_0, window_bounds = array<i64: 8, 256>}, {transform_indices = @transform_1, window_bounds = array<i64: 8, 256>}, {pipeline_mode = #tpu.pipeline_mode<synchronous>, transform_indices = @transform_2, window_bounds = array<i64: 256, 256>}, {transform_indices = @transform_3, window_bounds = array<i64: 8, 256>}]} {
    %c0 = arith.constant 0 : index
    %c0_0 = arith.constant 0 : index
    %0 = vector.load %arg3[%c0, %c0_0] : memref<256x256xbf16, #tpu.memory_space<vmem>>, vector<256x256xbf16>
    %c0_1 = arith.constant 0 : index
    %c0_2 = arith.constant 0 : index
    %1 = vector.load %arg1[%c0_1, %c0_2] : memref<8x256xf32, #tpu.memory_space<vmem>>, vector<8x256xf32>
    %2 = arith.truncf %1 : vector<8x256xf32> to vector<8x256xbf16>
    %cst = arith.constant dense<0.000000e+00> : vector<8x256xf32>
    %3 = tpu.matmul %2, %0, %cst {dimension_numbers = #tpu.dot_dimension_numbers<[1], [0], [0], [1], [0, 0, 1, 1], [], []>} : vector<8x256xbf16>, vector<256x256xbf16>, vector<8x256xf32> -> vector<8x256xf32>
    %c0_3 = arith.constant 0 : index
    %c0_4 = arith.constant 0 : index
    %4 = vector.load %arg2[%c0_3, %c0_4] : memref<8x256xf32, #tpu.memory_space<vmem>>, vector<8x256xf32>
    %5 = arith.truncf %4 : vector<8x256xf32> to vector<8x256xbf16>
    %cst_5 = arith.constant dense<0.000000e+00> : vector<8x256xf32>
    %6 = tpu.matmul %5, %0, %cst_5 {dimension_numbers = #tpu.dot_dimension_numbers<[1], [0], [0], [1], [0, 0, 1, 1], [], []>} : vector<8x256xbf16>, vector<256x256xbf16>, vector<8x256xf32> -> vector<8x256xf32>
    %7 = arith.mulf %3, %6 : vector<8x256xf32>
    %cst_6 = arith.constant 3.906250e-03 : f32
    %8 = vector.broadcast %cst_6 : f32 to vector<8x256xf32>
    %9 = arith.mulf %7, %8 : vector<8x256xf32>
    %10 = arith.truncf %9 : vector<8x256xf32> to vector<8x256xbf16>
    %cst_7 = arith.constant dense<0.000000e+00> : vector<8x256xf32>
    %11 = tpu.matmul %10, %0, %cst_7 {dimension_numbers = #tpu.dot_dimension_numbers<[1], [0], [0], [1], [0, 0, 1, 1], [], []>} : vector<8x256xbf16>, vector<256x256xbf16>, vector<8x256xf32> -> vector<8x256xf32>
    %c0_8 = arith.constant 0 : index
    %c0_9 = arith.constant 0 : index
    %12 = vector.load %arg4[%c0_8, %c0_9] : memref<8x256xf32, #tpu.memory_space<vmem>>, vector<8x256xf32>
    tpu.vector_store %arg4[%c0_8, %c0_9], %11 {strides = array<i32>} : memref<8x256xf32, #tpu.memory_space<vmem>>, vector<8x256xf32>,
    return
  }
  func.func @transform_0(%arg0: i32) -> (i32, i32) {
    %c0_i32 = arith.constant 0 : i32
    %c0_i32_0 = arith.constant 0 : i32
    return %arg0, %c0_i32 : i32, i32
  }
  func.func @transform_1(%arg0: i32) -> (i32, i32) {
    %c0_i32 = arith.constant 0 : i32
    %c0_i32_0 = arith.constant 0 : i32
    return %arg0, %c0_i32 : i32, i32
  }
  func.func @transform_2(%arg0: i32) -> (i32, i32) {
    %c0_i32 = arith.constant 0 : i32
    %c0_i32_0 = arith.constant 0 : i32
    %c0_i32_1 = arith.constant 0 : i32
    return %c0_i32, %c0_i32_0 : i32, i32
  }
  func.func @transform_3(%arg0: i32) -> (i32, i32) {
    %c0_i32 = arith.constant 0 : i32
    %c0_i32_0 = arith.constant 0 : i32
    return %arg0, %c0_i32 : i32, i32
  }
}

</mosaic_0001>

<bundles_post_ra>
// kernel: soft_xor.1
= control target key start
LH: loop header
LB: loop body
LE: loop exit
PB: predicated region body
PF: predicated region fallthrough
CT: control target
= control target key end

     0   :  { %8 = vsyncpa [#allocation3], 0  ;;  %s588_s15 = smov [#allocation2]   ;;  %s589_s17 = smov 128   ;;  %s792_s0 = inlined_call_operand.vmem [shape: f32[8,256], index: 0, kind: input, shape index: {}]   ;;  %s793_s1 = inlined_call_operand.vmem [shape: f32[8,256], index: 1, kind: input, shape index: {}]   ;;  %s794_s2 = inlined_call_operand.hbm [shape: bf16[256,256], index: 2, kind: input, shape index: {}]   ;;  %s795_s3 = inlined_call_operand.vmem [shape: f32[8,256], index: 3, kind: output, shape index: {}]  }
   0x1   :  { %s17_s14 = sshll.u32 %s794_s2, 4  ;;  %s19_s16 = sshll.u32 %s588_s15, 4  ;;  %s18_s14 = int_to_ptr.hbm [resolvable:$true] %s17_s14  ;;  %s20_s16 = int_to_ptr.vmem [resolvable:$true] %s19_s16 }
   0x2   :  { %s590_s18 = smov 8  }
   0x3   :  { %25 = dma.hbm_to_vmem [thread:$0]  %s18_s14, 4096, %s20_s16, [#allocation3], %s589_s17, %s589_s17, %s590_s18  }
   0x4   :  { %586 = dma.done.wait [#allocation3], 4096  }
   0x5   :  { %587 = vsyncadd [#allocation3], 4294963200  ;;  %v457_v0 = vld [vmem:[#allocation2 + $0x70] sm:$0xf]  ;;  %v542_v1 = vld [vmem:[#allocation2 + $0x74] sm:$0xf0] }
   0x6   :  { %v521_v2 = vld [vmem:[#allocation2 + $0xf0] sm:$0xf]  ;;  %v614_v3 = vor.u32 %v542_v1, %v457_v0  ;;  %v558_v4 = vld [vmem:[#allocation2 + $0xf4] sm:$0xf0]  ;;  %v541_v5 = vld [vmem:[#allocation2 + $0x74] sm:$0xf] }
   0x7   :  { %v459_v6 = vld [vmem:[#allocation2 + $0x78] sm:$0xf0]  ;;  %v616_v7 = vor.u32 %v558_v4, %v521_v2  ;;  %v557_v9 = vld [vmem:[#allocation2 + $0xf4] sm:$0xf]  ;;  %v449_v11 = vld [vmem:[#allocation2 + $0x60] sm:$0xf] }
   0x8   :  { %v618_v8 = vor.u32 %v541_v5, %v459_v6  ;;  %v523_v10 = vld [vmem:[#allocation2 + $0xf8] sm:$0xf0]  ;;  %226 = vmatpush.bf16.msra.mxu0 %v614_v3  ;;  %v540_v13 = vld [vmem:[#allocation2 + $0x64] sm:$0xf0]  ;;  %v513_v14 = vld [vmem:[#allocation2 + $0xe0] sm:$0xf] }
   0x9   :  { %v621_v12 = vor.u32 %v557_v9, %v523_v10  ;;  %v556_v15 = vld [vmem:[#allocation2 + $0xe4] sm:$0xf0]  ;;  %239 = vmatpush.bf16.msra.mxu1 %v616_v7  ;;  %v625_v16 = vor.u32 %v540_v13, %v449_v11  ;;  %v539_v18 = vld [vmem:[#allocation2 + $0x64] sm:$0xf]  ;;  %v451_v19 = vld [vmem:[#allocation2 + $0x68] sm:$0xf0] }
   0xa   :  { %252 = vmatpush.bf16.msra.mxu2 %v618_v8  ;;  %v627_v17 = vor.u32 %v556_v15, %v513_v14  ;;  %v555_v20 = vld [vmem:[#allocation2 + $0xe4] sm:$0xf]  ;;  %v630_v21 = vor.u32 %v539_v18, %v451_v19  ;;  %v515_v22 = vld [vmem:[#allocation2 + $0xe8] sm:$0xf0]  ;;  %v441_v23 = vld [vmem:[#allocation2 + $0x50] sm:$0xf] }
   0xb   :  { %265 = vmatpush.bf16.msra.mxu3 %v621_v12  ;;  %v538_v24 = vld [vmem:[#allocation2 + $0x54] sm:$0xf0]  ;;  %v632_v25 = vor.u32 %v555_v20, %v515_v22  ;;  %v505_v26 = vld [vmem:[#allocation2 + $0xd0] sm:$0xf]  ;;  %v537_v28 = vld [vmem:[#allocation2 + $0x54] sm:$0xf] }
   0xc   :  { %v554_v27 = vld [vmem:[#allocation2 + $0xd4] sm:$0xf0]  ;;  %227 = vmatpush.bf16.msra.mxu0 %v625_v16  ;;  %v635_v29 = vor.u32 %v538_v24, %v441_v23  ;;  %v443_v30 = vld [vmem:[#allocation2 + $0x58] sm:$0xf0]  ;;  %v553_v31 = vld [vmem:[#allocation2 + $0xd4] sm:$0xf] }
   0xd   :  { %v507_v32 = vld [vmem:[#allocation2 + $0xd8] sm:$0xf0]  ;;  %240 = vmatpush.bf16.msra.mxu1 %v627_v17  ;;  %v639_v33 = vor.u32 %v554_v27, %v505_v26  ;;  %v641_v34 = vor.u32 %v537_v28, %v443_v30  ;;  %v433_v35 = vld [vmem:[#allocation2 + $0x40] sm:$0xf]  ;;  %v536_v36 = vld [vmem:[#allocation2 + $0x44] sm:$0xf0] }
   0xe   :  { %253 = vmatpush.bf16.msra.mxu2 %v630_v21  ;;  %v497_v37 = vld [vmem:[#allocation2 + $0xc0] sm:$0xf]  ;;  %v644_v38 = vor.u32 %v553_v31, %v507_v32  ;;  %v552_v39 = vld [vmem:[#allocation2 + $0xc4] sm:$0xf0]  ;;  %v535_v40 = vld [vmem:[#allocation2 + $0x44] sm:$0xf]  ;;  %v647_v44 = vor.u32 %v536_v36, %v433_v35 }
   0xf   :  { %266 = vmatpush.bf16.msra.mxu3 %v632_v25  ;;  %v435_v41 = vld [vmem:[#allocation2 + $0x48] sm:$0xf0]  ;;  %v551_v42 = vld [vmem:[#allocation2 + $0xc4] sm:$0xf]  ;;  %v651_v45 = vor.u32 %v552_v39, %v497_v37  ;;  %v425_v47 = vld [vmem:[#allocation2 + $0x30] sm:$0xf] }
  0x10   :  { %v499_v43 = vld [vmem:[#allocation2 + $0xc8] sm:$0xf0]  ;;  %228 = vmatpush.bf16.msra.mxu0 %v635_v29  ;;  %v653_v46 = vor.u32 %v535_v40, %v435_v41  ;;  %v534_v48 = vld [vmem:[#allocation2 + $0x34] sm:$0xf0]  ;;  %v489_v49 = vld [vmem:[#allocation2 + $0xb0] sm:$0xf] }
  0x11   :  { %241 = vmatpush.bf16.msra.mxu1 %v639_v33  ;;  %v656_v50 = vor.u32 %v551_v42, %v499_v43  ;;  %v550_v51 = vld [vmem:[#allocation2 + $0xb4] sm:$0xf0]  ;;  %v533_v52 = vld [vmem:[#allocation2 + $0x34] sm:$0xf]  ;;  %v427_v53 = vld [vmem:[#allocation2 + $0x38] sm:$0xf0]  ;;  %v659_v56 = vor.u32 %v534_v48, %v425_v47 }
  0x12   :  { %254 = vmatpush.bf16.msra.mxu2 %v641_v34  ;;  %v549_v54 = vld [vmem:[#allocation2 + $0xb4] sm:$0xf]  ;;  %v491_v55 = vld [vmem:[#allocation2 + $0xb8] sm:$0xf0]  ;;  %v663_v57 = vor.u32 %v550_v51, %v489_v49  ;;  %v665_v58 = vor.u32 %v533_v52, %v427_v53  ;;  %v417_v59 = vld [vmem:[#allocation2 + $0x20] sm:$0xf] }
  0x13   :  { %267 = vmatpush.bf16.msra.mxu3 %v644_v38  ;;  %v532_v60 = vld [vmem:[#allocation2 + $0x24] sm:$0xf0]  ;;  %v481_v61 = vld [vmem:[#allocation2 + $0xa0] sm:$0xf]  ;;  %v668_v62 = vor.u32 %v549_v54, %v491_v55  ;;  %v531_v0 = vld [vmem:[#allocation2 + $0x24] sm:$0xf] }
  0x14   :  { %229 = vmatpush.bf16.msra.mxu0 %v647_v44  ;;  %v548_v63 = vld [vmem:[#allocation2 + $0xa4] sm:$0xf0]  ;;  %v419_v1 = vld [vmem:[#allocation2 + $0x28] sm:$0xf0]  ;;  %v547_v2 = vld [vmem:[#allocation2 + $0xa4] sm:$0xf]  ;;  %v671_v5 = vor.u32 %v532_v60, %v417_v59 }
  0x15   :  { %242 = vmatpush.bf16.msra.mxu1 %v651_v45  ;;  %v483_v4 = vld [vmem:[#allocation2 + $0xa8] sm:$0xf0]  ;;  %v675_v6 = vor.u32 %v548_v63, %v481_v61  ;;  %v677_v9 = vor.u32 %v531_v0, %v419_v1  ;;  %v409_v10 = vld [vmem:[#allocation2 + $0x10] sm:$0xf]  ;;  %v530_v11 = vld [vmem:[#allocation2 + $0x14] sm:$0xf0] }
  0x16   :  { %255 = vmatpush.bf16.msra.mxu2 %v653_v46  ;;  %v473_v13 = vld [vmem:[#allocation2 + $0x90] sm:$0xf]  ;;  %v680_v14 = vor.u32 %v547_v2, %v483_v4  ;;  %v546_v15 = vld [vmem:[#allocation2 + $0x94] sm:$0xf0]  ;;  %v529_v18 = vld [vmem:[#allocation2 + $0x14] sm:$0xf]  ;;  %v683_v23 = vor.u32 %v530_v11, %v409_v10 }
  0x17   :  { %268 = vmatpush.bf16.msra.mxu3 %v656_v50  ;;  %v411_v19 = vld [vmem:[#allocation2 + $0x18] sm:$0xf0]  ;;  %v545_v20 = vld [vmem:[#allocation2 + $0x94] sm:$0xf]  ;;  %v687_v24 = vor.u32 %v546_v15, %v473_v13  ;;  %v401_v27 = vld [vmem:[#allocation2] sm:$0xf] }
  0x18   :  { %230 = vmatpush.bf16.msra.mxu0 %v659_v56  ;;  %v475_v22 = vld [vmem:[#allocation2 + $0x98] sm:$0xf0]  ;;  %v689_v26 = vor.u32 %v529_v18, %v411_v19  ;;  %v528_v28 = vld [vmem:[#allocation2 + $0x4] sm:$0xf0]  ;;  %v465_v30 = vld [vmem:[#allocation2 + $0x80] sm:$0xf] }
  0x19   :  { %243 = vmatpush.bf16.msra.mxu1 %v663_v57  ;;  %v692_v31 = vor.u32 %v545_v20, %v475_v22  ;;  %v544_v32 = vld [vmem:[#allocation2 + $0x84] sm:$0xf0]  ;;  %v527_v35 = vld [vmem:[#allocation2 + $0x4] sm:$0xf]  ;;  %v403_v36 = vld [vmem:[#allocation2 + $0x8] sm:$0xf0]  ;;  %v695_v40 = vor.u32 %v528_v28, %v401_v27 }
  0x1a   :  { %256 = vmatpush.bf16.msra.mxu2 %v665_v58  ;;  %v543_v37 = vld [vmem:[#allocation2 + $0x84] sm:$0xf]  ;;  %v467_v39 = vld [vmem:[#allocation2 + $0x88] sm:$0xf0]  ;;  %v699_v41 = vor.u32 %v544_v32, %v465_v30  ;;  %v701_v42 = vor.u32 %v527_v35, %v403_v36 }
  0x1b   :  { %269 = vmatpush.bf16.msra.mxu3 %v668_v62  ;;  %v62_v43 = vld [vmem:[%s792_s0] sm:$0xff]  ;;  %v707_v47 = vor.u32 %v543_v37, %v467_v39  ;;  %v63_v48 = vld [vmem:[%s792_s0 + $0x8] sm:$0xff] }
  0x1c   :  { %231 = vmatpush.bf16.msra.mxu0 %v671_v5  ;;  %v64_v49 = vpack.c.bf16 %v62_v43, %v62_v43  ;;  %v65_v51 = vpack.c.bf16 %v63_v48, %v63_v48  ;;  %v278_v52 = vld [vmem:[%s793_s1] sm:$0xff]  ;;  %v279_v53 = vld [vmem:[%s793_s1 + $0x8] sm:$0xff] }
  0x1d   :  { %244 = vmatpush.bf16.msra.mxu1 %v675_v6  ;;  %v280_v54 = vpack.c.bf16 %v278_v52, %v278_v52  ;;  %v281_v55 = vpack.c.bf16 %v279_v53, %v279_v53 }
  0x1e   :  { %257 = vmatpush.bf16.msra.mxu2 %v677_v9 }
  0x1f   :  { %270 = vmatpush.bf16.msra.mxu3 %v680_v14 }
  0x20   :  { %232 = vmatpush.bf16.msra.mxu0 %v683_v23 }
  0x21   :  { %245 = vmatpush.bf16.msra.mxu1 %v687_v24 }
  0x22   :  { %258 = vmatpush.bf16.msra.mxu2 %v689_v26 }
  0x23   :  { %271 = vmatpush.bf16.msra.mxu3 %v692_v31 }
  0x24   :  { %233 = vmatpush.bf16.msra.mxu0 %v695_v40 }
  0x25   :  { %246 = vmatpush.bf16.msra.mxu1 %v699_v41 }
  0x26   :  { %259 = vmatpush.bf16.msra.mxu2 %v701_v42 }
  0x27   :  { %272 = vmatpush.bf16.msra.mxu3 %v707_v47  ;;  %234 = vmatmul.bf16.vlgmr.msra.gmra.mxu0 %v64_v49 }
  0x28   :  { %282 = vmatpush.bf16.msrb.mxu0 %v614_v3  ;;  %247 = vmatmul.bf16.vlgmr.msra.gmra.mxu1 %v65_v51 }
  0x29   :  { %295 = vmatpush.bf16.msrb.mxu1 %v616_v7  ;;  %260 = vmatmul.bf16.vlgmr.msra.gmra.mxu2 %v64_v49 }
  0x2a   :  { %308 = vmatpush.bf16.msrb.mxu2 %v618_v8  ;;  %273 = vmatmul.bf16.vlgmr.msra.gmra.mxu3 %v65_v51 }
  0x2b   :  { %321 = vmatpush.bf16.msrb.mxu3 %v621_v12 }
  0x2c   :  { %283 = vmatpush.bf16.msrb.mxu0 %v625_v16 }
  0x2d   :  { %296 = vmatpush.bf16.msrb.mxu1 %v627_v17 }
  0x2e   :  { %309 = vmatpush.bf16.msrb.mxu2 %v630_v21 }
  0x2f   :  { %322 = vmatpush.bf16.msrb.mxu3 %v632_v25 }
  0x30   :  { %284 = vmatpush.bf16.msrb.mxu0 %v635_v29 }
  0x31   :  { %297 = vmatpush.bf16.msrb.mxu1 %v639_v33 }
  0x32   :  { %310 = vmatpush.bf16.msrb.mxu2 %v641_v34 }
  0x33   :  { %323 = vmatpush.bf16.msrb.mxu3 %v644_v38 }
  0x34   :  { %285 = vmatpush.bf16.msrb.mxu0 %v647_v44 }
  0x35   :  { %298 = vmatpush.bf16.msrb.mxu1 %v651_v45 }
  0x36   :  { %311 = vmatpush.bf16.msrb.mxu2 %v653_v46 }
  0x37   :  { %324 = vmatpush.bf16.msrb.mxu3 %v656_v50 }
  0x38   :  { %286 = vmatpush.bf16.msrb.mxu0 %v659_v56 }
  0x39   :  { %299 = vmatpush.bf16.msrb.mxu1 %v663_v57 }
  0x3a   :  { %312 = vmatpush.bf16.msrb.mxu2 %v665_v58 }
  0x3b   :  { %325 = vmatpush.bf16.msrb.mxu3 %v668_v62 }
  0x3c   :  { %287 = vmatpush.bf16.msrb.mxu0 %v671_v5 }
  0x3d   :  { %300 = vmatpush.bf16.msrb.mxu1 %v675_v6 }
  0x3e   :  { %313 = vmatpush.bf16.msrb.mxu2 %v677_v9 }
  0x3f   :  { %326 = vmatpush.bf16.msrb.mxu3 %v680_v14 }
  0x40   :  { %288 = vmatpush.bf16.msrb.mxu0 %v683_v23 }
  0x41   :  { %301 = vmatpush.bf16.msrb.mxu1 %v687_v24 }
  0x42   :  { %314 = vmatpush.bf16.msrb.mxu2 %v689_v26 }
  0x43   :  { %327 = vmatpush.bf16.msrb.mxu3 %v692_v31 }
  0x44   :  { %289 = vmatpush.bf16.msrb.mxu0 %v695_v40 }
  0x45   :  { %302 = vmatpush.bf16.msrb.mxu1 %v699_v41 }
  0x46   :  { %315 = vmatpush.bf16.msrb.mxu2 %v701_v42 }
  0x47   :  { %328 = vmatpush.bf16.msrb.mxu3 %v707_v47  ;;  %290 = vmatmul.bf16.vlgmr.msrb.gmra.mxu0 %v280_v54 }
  0x48   :  { %340 = vmatpush.bf16.msra.mxu0 %v614_v3  ;;  %303 = vmatmul.bf16.vlgmr.msrb.gmra.mxu1 %v281_v55 }
  0x49   :  { %316 = vmatmul.bf16.vlgmr.msrb.gmra.mxu2 %v280_v54  ;;  %353 = vmatpush.bf16.msra.mxu1 %v616_v7 }
  0x4a   :  { %366 = vmatpush.bf16.msra.mxu2 %v618_v8  ;;  %329 = vmatmul.bf16.vlgmr.msrb.gmra.mxu3 %v281_v55 }
  0x4b   :  { %379 = vmatpush.bf16.msra.mxu3 %v621_v12 }
  0x4c   :  { %341 = vmatpush.bf16.msra.mxu0 %v625_v16 }
  0x4d   :  { %354 = vmatpush.bf16.msra.mxu1 %v627_v17 }
  0x4e   :  { %367 = vmatpush.bf16.msra.mxu2 %v630_v21 }
  0x4f   :  { %380 = vmatpush.bf16.msra.mxu3 %v632_v25 }
  0x50   :  { %342 = vmatpush.bf16.msra.mxu0 %v635_v29 }
  0x51   :  { %355 = vmatpush.bf16.msra.mxu1 %v639_v33 }
  0x52   :  { %368 = vmatpush.bf16.msra.mxu2 %v641_v34 }
  0x53   :  { %381 = vmatpush.bf16.msra.mxu3 %v644_v38 }
  0x54   :  { %343 = vmatpush.bf16.msra.mxu0 %v647_v44 }
  0x55   :  { %356 = vmatpush.bf16.msra.mxu1 %v651_v45 }
  0x56   :  { %369 = vmatpush.bf16.msra.mxu2 %v653_v46 }
  0x57   :  { %382 = vmatpush.bf16.msra.mxu3 %v656_v50 }
  0x58   :  { %344 = vmatpush.bf16.msra.mxu0 %v659_v56 }
  0x59   :  { %357 = vmatpush.bf16.msra.mxu1 %v663_v57 }
  0x5a   :  { %370 = vmatpush.bf16.msra.mxu2 %v665_v58 }
  0x5b   :  { %383 = vmatpush.bf16.msra.mxu3 %v668_v62 }
  0x5c   :  { %345 = vmatpush.bf16.msra.mxu0 %v671_v5 }
  0x5d   :  { %358 = vmatpush.bf16.msra.mxu1 %v675_v6 }
  0x5e   :  { %371 = vmatpush.bf16.msra.mxu2 %v677_v9 }
  0x5f   :  { %384 = vmatpush.bf16.msra.mxu3 %v680_v14 }
  0x60   :  { %346 = vmatpush.bf16.msra.mxu0 %v683_v23 }
  0x61   :  { %359 = vmatpush.bf16.msra.mxu1 %v687_v24 }
  0x62   :  { %372 = vmatpush.bf16.msra.mxu2 %v689_v26 }
  0x63   :  { %385 = vmatpush.bf16.msra.mxu3 %v692_v31 }
  0x64   :  { %347 = vmatpush.bf16.msra.mxu0 %v695_v40 }
  0x65   :  { %360 = vmatpush.bf16.msra.mxu1 %v699_v41 }
  0x66   :  { %373 = vmatpush.bf16.msra.mxu2 %v701_v42 }
  0x67   :  { %386 = vmatpush.bf16.msra.mxu3 %v707_v47 }
  0xa4   :  { %v235_v3 = vpop.f32.mrf.mxu0 }
  0xa5   :  { %v248_v7 = vpop.f32.mrf.mxu1 }
  0xa6   :  { %v249_v34 = vadd.f32 %v248_v7, %v235_v3 }
  0xac   :  { %v261_v8 = vpop.f32.mrf.mxu2  ;;  %v237_v16 = vpop.f32.mrf.mxu0 }
  0xad   :  { %v274_v12 = vpop.f32.mrf.mxu3  ;;  %v250_v17 = vpop.f32.mrf.mxu1 }
  0xae   :  { %v275_v58 = vadd.f32 %v274_v12, %v261_v8 }
  0xb4   :  { %v263_v21 = vpop.f32.mrf.mxu2 }
  0xb5   :  { %v276_v25 = vpop.f32.mrf.mxu3 }
  0xc4   :  { %v291_v29 = vpop.f32.mrf.mxu0 }
  0xc5   :  { %v304_v33 = vpop.f32.mrf.mxu1 }
  0xc6   :  { %v305_v38 = vadd.f32 %v304_v33, %v291_v29 }
  0xc8   :  { %v334_v44 = vmul.f32 %v305_v38, %v249_v34 }
  0xca   :  { %v336_v45 = vmul.f32 0.00390625, %v334_v44 }
  0xcc   :  { %v317_v46 = vpop.f32.mrf.mxu2  ;;  %v338_v50 = vpack.c.bf16 %v336_v45, %v336_v45  ;;  %v293_v57 = vpop.f32.mrf.mxu0 }
  0xcd   :  { %v330_v56 = vpop.f32.mrf.mxu3  ;;  %v306_v60 = vpop.f32.mrf.mxu1 }
  0xce   :  { %v331_v59 = vadd.f32 %v330_v56, %v317_v46  ;;  %348 = vmatmul.bf16.vlgmr.msra.gmra.mxu0 %v338_v50  ;;  %374 = vmatmul.bf16.vlgmr.msra.gmra.mxu2 %v338_v50 }
  0xd0   :  { %v335_v61 = vmul.f32 %v331_v59, %v275_v58 }
  0xd2   :  { %v337_v62 = vmul.f32 0.00390625, %v335_v61 }
  0xd4   :  { %v339_v63 = vpack.c.bf16 %v337_v62, %v337_v62  ;;  %v319_v0 = vpop.f32.mrf.mxu2 }
  0xd5   :  { %v332_v1 = vpop.f32.mrf.mxu3 }
  0xd6   :  { %361 = vmatmul.bf16.vlgmr.msra.gmra.mxu1 %v339_v63  ;;  %387 = vmatmul.bf16.vlgmr.msra.gmra.mxu3 %v339_v63 }
 0x14b   :  { %v349_v2 = vpop.f32.mrf.mxu0 }
 0x151   :  { %v375_v4 = vpop.f32.mrf.mxu2 }
 0x153   :  { %v362_v5 = vpop.f32.mrf.mxu1  ;;  %v351_v9 = vpop.f32.mrf.mxu0 }
 0x154   :  { %v363_v6 = vadd.f32 %v362_v5, %v349_v2 }
 0x156   :  { %392 = vst [vmem:[%s795_s3] sm:$0xff] %v363_v6 }
 0x159   :  { %v388_v10 = vpop.f32.mrf.mxu3  ;;  %v377_v13 = vpop.f32.mrf.mxu2 }
 0x15a   :  { %v389_v11 = vadd.f32 %v388_v10, %v375_v4 }
 0x15b   :  { %v364_v14 = vpop.f32.mrf.mxu1 }
 0x15c   :  { %393 = vst [vmem:[%s795_s3 + $0x8] sm:$0xff] %v389_v11 }
 0x161   :  { %v390_v15 = vpop.f32.mrf.mxu3 }
 0x162   :  { %398 = vsyncpa [#allocation3], 1 }

</bundles_post_ra>
